<compile_context>
chip_gen: v7x
topology: tpu7x:2x2x1
jax: 0.10.0
libtpu: 0.0.40
codegen_flags: <defaults>
</compile_context>

<pallas_src>
import math

import jax
import jax.numpy as jnp
from jax.experimental import pallas as pl
from jax.experimental.pallas import tpu as pltpu


def _flat_dim(x, dim):
    d_all = math.prod(x.shape[1:]) if x.ndim > 1 else 1
    if dim == -1:
        return d_all
    assert d_all == dim, "view size mismatch"
    return dim


def view_layer(x, dim=-1):
    """ViewLayer.forward: x.view(x.size(0), dim).

    Row-major flatten is pure metadata — no kernel, no HBM traffic.
    This is the path to use in a real model.
    """
    return x.reshape(x.shape[0], _flat_dim(x, dim))


def _make_row_chunks(rows, row_bytes, target_bytes=8 << 20, max_chunks=32):
    """Split `rows` into contiguous row-chunks of ~target_bytes each.

    All values are Python ints (static at trace time), so the kernel body can
    unroll one async DMA per chunk.  A ragged last chunk is fine — DMA needs
    no (8,128) alignment, so there is no divisibility fallback.
    """
    chunk_rows = max(1, target_bytes // max(row_bytes, 1))
    num_chunks = -(-rows // chunk_rows)
    if num_chunks > max_chunks:
        chunk_rows = -(-rows // max_chunks)
    chunks = []
    start = 0
    while start < rows:
        size = min(chunk_rows, rows - start)
        chunks.append((start, size))
        start += size
    return chunks


def _make_hbm_copy_kernel(chunks):
    """Kernel: chunked HBM->HBM identity copy, no VMEM staging, no vreg work."""

    def kernel(x_hbm, o_hbm, sems):
        copies = []
        for i, (start, size) in enumerate(chunks):
            cp = pltpu.make_async_copy(
                x_hbm.at[pl.ds(start, size), :],
                o_hbm.at[pl.ds(start, size), :],
                sems.at[i],
            )
            cp.start()
            copies.append(cp)
        for cp in copies:
            cp.wait()

    return kernel


def view_layer_materialized(x, dim=-1):
    """Same semantics, but materializes the flattened tensor into a fresh,
    contiguous buffer via chunked HBM->HBM DMA.

    Only use when a fresh buffer is genuinely required; otherwise call
    `view_layer` (zero-cost view).
    """
    n = x.shape[0]
    d = _flat_dim(x, dim)
    itemsize = jnp.dtype(x.dtype).itemsize

    # Pure-metadata flatten of the row-major byte stream; the kernel then
    # copies full contiguous rows, so any (n, d) works — no layout fallback.
    x2 = x.reshape(n, d)
    chunks = _make_row_chunks(n, d * itemsize)
    num_chunks = len(chunks)

    out = pl.pallas_call(
        _make_hbm_copy_kernel(chunks),
        out_shape=jax.ShapeDtypeStruct((n, d), x.dtype),
        in_specs=[pl.BlockSpec(memory_space=pl.ANY)],
        out_specs=pl.BlockSpec(memory_space=pl.ANY),
        scratch_shapes=[pltpu.SemaphoreType.DMA((num_chunks,))],
        cost_estimate=pl.CostEstimate(
            flops=0,
            transcendentals=0,
            bytes_accessed=2 * n * d * itemsize,
        ),
    )(x2)
    return out


if __name__ == "__main__":
    key = jax.random.PRNGKey(0)
    # Small NCHW input consistent with an autoencoder-style flatten.
    x = jax.random.normal(key, (2, 4, 16, 16), dtype=jnp.float32)

    # Production path: zero-cost view (no kernel launched).
    y_view = view_layer(x, dim=-1)

    # Pallas path: materialized copy via chunked HBM->HBM DMA.
    # (Toy-sized here just to exercise the kernel; never benchmark this shape —
    #  at 2 KiB it measures nothing but fixed launch overhead.)
    y_kern = jax.block_until_ready(view_layer_materialized(x, dim=-1))

    # Reference: plain JAX flatten (matches torch x.view(N, -1)).
    y_ref = x.reshape(x.shape[0], -1)
    assert y_view.shape == (2, 4 * 16 * 16), y_view.shape
    assert y_kern.shape == (2, 4 * 16 * 16), y_kern.shape
    assert y_kern.dtype == x.dtype
    assert jnp.array_equal(y_view, y_ref), "view path mismatch vs reference"
    assert jnp.array_equal(y_kern, y_ref), "kernel path mismatch vs reference"

    print("KERNEL_OK")
</pallas_src>

<mosaic_0001>
module attributes {stable_mosaic.version = 11 : i64} {
  func.func @kernel(%arg0: memref<2x1024xf32, #tpu.memory_space<any>>, %arg1: memref<2x1024xf32, #tpu.memory_space<any>>, %arg2: memref<1x!tpu.dma_semaphore, #tpu.memory_space<semaphore_mem>>) attributes {dimension_semantics = [], scalar_prefetch = 0 : i64, scratch_operands = 1 : i64, tpu.core_type = #tpu.core_type<tc>} {
    %c0_i32 = arith.constant 0 : i32
    %c0_i32_0 = arith.constant 0 : i32
    %c0_i32_1 = arith.constant 0 : i32
    %0 = tpu.memref_slice %arg0[%c0_i32_0, %c0_i32_1] : memref<2x1024xf32, #tpu.memory_space<any>> -> memref<2x1024xf32, #tpu.memory_space<any>>
    %c0_i32_2 = arith.constant 0 : i32
    %c0_i32_3 = arith.constant 0 : i32
    %1 = tpu.memref_slice %arg1[%c0_i32_2, %c0_i32_3] : memref<2x1024xf32, #tpu.memory_space<any>> -> memref<2x1024xf32, #tpu.memory_space<any>>
    %2 = tpu.memref_slice %arg2[%c0_i32] : memref<1x!tpu.dma_semaphore, #tpu.memory_space<semaphore_mem>> -> memref<1x!tpu.dma_semaphore, #tpu.memory_space<semaphore_mem>>
    %3 = tpu.memref_squeeze %2 : memref<1x!tpu.dma_semaphore, #tpu.memory_space<semaphore_mem>> -> memref<!tpu.dma_semaphore, #tpu.memory_space<semaphore_mem>>
    tpu.enqueue_dma source(%0 : memref<2x1024xf32, #tpu.memory_space<any>>) target(%1 : memref<2x1024xf32, #tpu.memory_space<any>>) target_semaphore(%3 : memref<!tpu.dma_semaphore, #tpu.memory_space<semaphore_mem>>)
    %c0_i32_4 = arith.constant 0 : i32
    %c0_i32_5 = arith.constant 0 : i32
    %c0_i32_6 = arith.constant 0 : i32
    %4 = tpu.memref_slice %arg0[%c0_i32_5, %c0_i32_6] : memref<2x1024xf32, #tpu.memory_space<any>> -> memref<2x1024xf32, #tpu.memory_space<any>>
    %c0_i32_7 = arith.constant 0 : i32
    %c0_i32_8 = arith.constant 0 : i32
    %5 = tpu.memref_slice %arg1[%c0_i32_7, %c0_i32_8] : memref<2x1024xf32, #tpu.memory_space<any>> -> memref<2x1024xf32, #tpu.memory_space<any>>
    %6 = tpu.memref_slice %arg2[%c0_i32_4] : memref<1x!tpu.dma_semaphore, #tpu.memory_space<semaphore_mem>> -> memref<1x!tpu.dma_semaphore, #tpu.memory_space<semaphore_mem>>
    %7 = tpu.memref_squeeze %6 : memref<1x!tpu.dma_semaphore, #tpu.memory_space<semaphore_mem>> -> memref<!tpu.dma_semaphore, #tpu.memory_space<semaphore_mem>>
    tpu.wait_dma2 semaphore(%7 : memref<!tpu.dma_semaphore, #tpu.memory_space<semaphore_mem>>) src(%4 : memref<2x1024xf32, #tpu.memory_space<any>>) dst(%5 : memref<2x1024xf32, #tpu.memory_space<any>>)
    return
  }
}

</mosaic_0001>

<bundles_post_ra>
// kernel: tpu_custom_call.1
= control target key start
LH: loop header
LB: loop body
LE: loop exit
PB: predicated region body
PF: predicated region fallthrough
CT: control target
= control target key end

     0   :  { %s35_s6 = smov [#allocation2]   ;;  %s36_s7 = smov [#allocation3]   ;;  %s54_s0 = inlined_call_operand.hbm [shape: f32[2,1024], index: 0, kind: input, shape index: {}]   ;;  %s55_s1 = inlined_call_operand.hbm [shape: f32[2,1024], index: 1, kind: output, shape index: {}]  }
   0x1   :  { %s37_s8 = smov 0  }
   0x2   :  { %18 = dma.general %s54_s0, 256, %s55_s1, %s35_s6, %s36_s7, [#allocation4], %s37_s8, 0  }
   0x3   :  { %33 = dma.done.wait [#allocation2], 256 }
   0x4   :  { %34 = vsyncadd [#allocation2], 4294967040 }
   0x5   :  { %23 = vsyncmov [#allocation2] }
   0x8   :  { %s24_s13 = vpop.sfrf %23 }
   0x9   :  { %p29_p0 = scmp.ne.s32.totalorder %s24_s13, 0 }
   0xb   :  { %28 = shalt.err (%p29_p0)  }

</bundles_post_ra>
